<compile_context>
chip_gen: v6e
topology: v6e:2x2x1
jax: 0.10.0
libtpu: 0.0.40
codegen_flags: <defaults>
</compile_context>

<pallas_src>
import functools

import numpy as np
import jax
import jax.numpy as jnp
from jax import lax
from jax.experimental import pallas as pl
from jax.experimental.pallas import tpu as pltpu


# --------------------------------------------------------------------------
# selection-matrix constructors (host-side, tiny constants)
# --------------------------------------------------------------------------

def _make_csel_cat(w, factor, dtype):
    """(W, f*wf): csel_cat[w_in, fw*wf + w'] = 1  iff  w_in == w'*f + fw  (gather cols)."""
    wf = w // factor
    m = np.zeros((w, factor * wf), dtype=np.float32)
    for fw in range(factor):
        m[np.arange(wf) * factor + fw, fw * wf + np.arange(wf)] = 1.0
    return jnp.asarray(m, dtype=dtype)


def _make_cselT(wo, factor, dtype):
    """(f, w, wo): cselT[fw, w', w'*f + fw] = 1  (scatter cols)."""
    w = wo // factor
    m = np.zeros((factor, w, wo), dtype=np.float32)
    for fw in range(factor):
        m[fw, np.arange(w), np.arange(w) * factor + fw] = 1.0
    return jnp.asarray(m, dtype=dtype)


# --------------------------------------------------------------------------
# dtype / precision handling
# --------------------------------------------------------------------------

def _canon_dtype(x):
    """Route everything through f32/bf16; remember the original dtype."""
    if x.dtype in (jnp.float32, jnp.bfloat16):
        return x, x.dtype
    # TODO(synk): exact integer path needs a non-MXU lane de-interleave.
    return x.astype(jnp.float32), x.dtype


def _dot_kwargs(dtype):
    if dtype == jnp.bfloat16:
        # Single MXU pass, bf16 accumulate/output: exact for a 0/1 selector
        # (each output element is a single selected bf16 value).
        return dict(precision=lax.Precision.DEFAULT)
    # f32: HIGHEST (6 bf16 passes) is the cheapest *exact* MXU mode here;
    # HIGH/X3 would introduce ~2^-17 relative error on a pure permutation.
    return dict(preferred_element_type=jnp.float32,
                precision=lax.Precision.HIGHEST)


# --------------------------------------------------------------------------
# block sizing
# --------------------------------------------------------------------------

def _hw_budgets():
    """(target block bytes, vmem_limit_bytes), tuned per VMEM capacity."""
    try:
        info = pltpu.get_tpu_info()
        vmem = getattr(info, "vmem_capacity_bytes", 0) or 0
    except Exception:
        vmem = 0
    if vmem >= (100 << 20):          # v5e / v6e: 128 MiB VMEM
        return 6 << 20, 64 << 20
    if vmem > 0:                     # v7x-class: 64 MiB per TensorCore
        return 3 << 20, 40 << 20
    return 2 << 20, 32 << 20         # unknown: conservative


def _sublane_align(itemsize):
    # native tile second-to-last dim: 8 (4B), 16 (2B), 32 (1B)
    return max(8, 32 // max(1, itemsize))


def _pick_block(n_groups, group_bytes, rows_per_group, itemsize, target_bytes):
    """Largest divisor of n_groups whose block fits target_bytes, keeps the
    block sublane dim aligned, and (preferably) leaves >= 4 grid steps."""
    align = _sublane_align(itemsize)
    divisors = [d for d in range(1, n_groups + 1) if n_groups % d == 0]
    fits = [d for d in divisors if d * group_bytes <= target_bytes] or [1]

    def aligned(d, a):
        return (d * rows_per_group) % a == 0

    for min_steps, a in ((4, align), (2, align), (1, align), (1, 8)):
        cand = [d for d in fits if aligned(d, a) and n_groups // d >= min_steps]
        if cand:
            return max(cand)
    # Block == full array is always a legal BlockSpec.
    # TODO(synk): pad B*C / H for huge inputs that never hit 8-sublane alignment.
    return n_groups


# --------------------------------------------------------------------------
# kernels
# --------------------------------------------------------------------------

def _squeeze_kernel(x_ref, csel_ref, o_ref, *, factor, dot_kwargs):
    # x_ref   : (cblk*hf, f*W)  rows=(c,h'), lanes=(fh,w)  -- row de-interleave is free
    # csel_ref: (W, f*wf)       concatenated 0/1 column selectors (one per fw)
    # o_ref   : (cblk, f*f, hf, wf)
    cblk, _, hf, wf = o_ref.shape
    w = csel_ref.shape[0]
    for fh in range(factor):
        rows = x_ref[:, fh * w:(fh + 1) * w]                       # (cblk*hf, W)
        res = jnp.dot(rows, csel_ref[...], **dot_kwargs)           # (cblk*hf, f*wf)
        for fw in range(factor):
            piece = res[:, fw * wf:(fw + 1) * wf]                  # (cblk*hf, wf)
            o_ref[:, fh * factor + fw, :, :] = (
                piece.reshape(cblk, hf, wf).astype(o_ref.dtype))


def _unsqueeze_kernel(x_ref, cselT_ref, o_ref, *, factor, dot_kwargs):
    # x_ref    : (cblk, f*f, h, w)
    # cselT_ref: (f, w, wo)      0/1 column scatter, wo = f*w
    # o_ref    : (cblk*h, f*wo)  rows=(c,h), lanes=(fh, W_out)
    cblk, _, h, w = x_ref.shape
    wo = w * factor
    for fh in range(factor):
        acc = None
        for fw in range(factor):
            xs = x_ref[:, fh * factor + fw, :, :].reshape(cblk * h, w)
            t = jnp.dot(xs, cselT_ref[fw], **dot_kwargs)           # disjoint lanes
            acc = t if acc is None else acc + t                    # exact: other lanes are 0
        o_ref[:, fh * wo:(fh + 1) * wo] = acc.astype(o_ref.dtype)


# --------------------------------------------------------------------------
# wrappers (all reshapes here are contiguous / zero-copy)
# --------------------------------------------------------------------------

def squeeze_bchw(x, factor=2):
    b, c, h, w = x.shape
    assert h % factor == 0 and w % factor == 0
    hf, wf = h // factor, w // factor
    bc = b * c

    x, orig_dtype = _canon_dtype(x)
    dkw = _dot_kwargs(x.dtype)
    csel = _make_csel_cat(w, factor, x.dtype)

    target_bytes, vmem_limit = _hw_budgets()
    itemsize = x.dtype.itemsize
    cblk = _pick_block(bc, h * w * itemsize, hf, itemsize, target_bytes)

    x2d = x.reshape(bc * hf, factor * w)        # free: rows=(b,c,h'), lanes=(fh,w)
    kernel = functools.partial(_squeeze_kernel, factor=factor, dot_kwargs=dkw)

    out = pl.pallas_call(
        kernel,
        out_shape=jax.ShapeDtypeStruct((bc, factor * factor, hf, wf), x.dtype),
        grid_spec=pltpu.PrefetchScalarGridSpec(
            num_scalar_prefetch=0,
            grid=(bc // cblk,),
            in_specs=[
                pl.BlockSpec((cblk * hf, factor * w), lambda i: (i, 0)),
                pl.BlockSpec((w, factor * wf), lambda i: (0, 0)),
            ],
            out_specs=pl.BlockSpec((cblk, factor * factor, hf, wf),
                                   lambda i: (i, 0, 0, 0)),
        ),
        compiler_params=pltpu.CompilerParams(
            dimension_semantics=("parallel",),
            vmem_limit_bytes=vmem_limit),
    )(x2d, csel)
    out = out.reshape(b, c * factor * factor, hf, wf)   # free reshape
    return out if out.dtype == orig_dtype else out.astype(orig_dtype)


def unsqueeze_bchw(x, factor=2):
    b, c, h, w = x.shape
    ff = factor * factor
    assert c >= 4 and c % ff == 0
    co = c // ff
    ho, wo = h * factor, w * factor
    groups = b * co

    x, orig_dtype = _canon_dtype(x)
    dkw = _dot_kwargs(x.dtype)
    cselT = _make_cselT(wo, factor, x.dtype)

    target_bytes, vmem_limit = _hw_budgets()
    itemsize = x.dtype.itemsize
    cblk = _pick_block(groups, ff * h * w * itemsize, h, itemsize, target_bytes)

    x4 = x.reshape(groups, ff, h, w)            # free reshape
    kernel = functools.partial(_unsqueeze_kernel, factor=factor, dot_kwargs=dkw)

    out2d = pl.pallas_call(
        kernel,
        out_shape=jax.ShapeDtypeStruct((groups * h, factor * wo), x.dtype),
        grid_spec=pltpu.PrefetchScalarGridSpec(
            num_scalar_prefetch=0,
            grid=(groups // cblk,),
            in_specs=[
                pl.BlockSpec((cblk, ff, h, w), lambda i: (i, 0, 0, 0)),
                pl.BlockSpec((factor, w, wo), lambda i: (0, 0, 0)),
            ],
            out_specs=pl.BlockSpec((cblk * h, factor * wo), lambda i: (i, 0)),
        ),
        compiler_params=pltpu.CompilerParams(
            dimension_semantics=("parallel",),
            vmem_limit_bytes=vmem_limit),
    )(x4, cselT)
    out = out2d.reshape(b, co, ho, wo)          # free reshape
    return out if out.dtype == orig_dtype else out.astype(orig_dtype)


def squeeze_forward(x, factor=2, reverse=False):
    """Mirrors Squeeze.forward(x, reverse)."""
    if x.ndim != 4:
        raise NotImplementedError
    return unsqueeze_bchw(x, factor) if reverse else squeeze_bchw(x, factor)


def _squeeze_ref(x, f):
    # Pure-JAX reference mirroring the PyTorch view/permute/view (checking only).
    b, c, h, w = x.shape
    y = x.reshape(b, c, h // f, f, w // f, f).transpose(0, 1, 3, 5, 2, 4)
    return y.reshape(b, c * f * f, h // f, w // f)


if __name__ == "__main__":
    key = jax.random.PRNGKey(0)
    x = jax.random.normal(key, (2, 4, 16, 16), dtype=jnp.float32)

    # float32 (exact 6-pass MXU permutation)
    y = jax.block_until_ready(squeeze_forward(x, factor=2, reverse=False))
    assert y.shape == (2, 16, 8, 8) and y.dtype == x.dtype
    ref = _squeeze_ref(x, 2)
    np.testing.assert_allclose(np.asarray(y), np.asarray(ref), rtol=1e-6, atol=1e-6)

    xr = jax.block_until_ready(squeeze_forward(y, factor=2, reverse=True))
    np.testing.assert_allclose(np.asarray(xr), np.asarray(x), rtol=1e-6, atol=1e-6)

    # bfloat16 (single-pass MXU, bf16 accumulate -- must be bit-exact)
    xb = x.astype(jnp.bfloat16)
    yb = jax.block_until_ready(squeeze_forward(xb, factor=2, reverse=False))
    np.testing.assert_array_equal(np.asarray(yb.astype(jnp.float32)),
                                  np.asarray(_squeeze_ref(xb, 2).astype(jnp.float32)))
    xrb = jax.block_until_ready(squeeze_forward(yb, factor=2, reverse=True))
    np.testing.assert_array_equal(np.asarray(xrb.astype(jnp.float32)),
                                  np.asarray(xb.astype(jnp.float32)))

    print("KERNEL_OK")
</pallas_src>

<mosaic_0001>
module attributes {stable_mosaic.version = 11 : i64} {
  func.func @_squeeze_kernel(%arg0: i32, %arg1: memref<16x32xf32, #tpu.memory_space<vmem>>, %arg2: memref<16x16xf32, #tpu.memory_space<vmem>>, %arg3: memref<2x4x8x8xf32, #tpu.memory_space<vmem>>) attributes {dimension_semantics = [#tpu.dimension_semantics<parallel>], iteration_bounds = array<i64: 4>, scalar_prefetch = 0 : i64, scratch_operands = 0 : i64, tpu.core_type = #tpu.core_type<tc>, window_params = [{transform_indices = @transform_0, window_bounds = array<i64: 16, 32>}, {pipeline_mode = #tpu.pipeline_mode<synchronous>, transform_indices = @transform_1, window_bounds = array<i64: 16, 16>}, {transform_indices = @transform_2, window_bounds = array<i64: 2, 4, 8, 8>}]} {
    %c0 = arith.constant 0 : index
    %c0_0 = arith.constant 0 : index
    %0 = vector.load %arg1[%c0, %c0_0] : memref<16x32xf32, #tpu.memory_space<vmem>>, vector<16x16xf32>
    %c0_1 = arith.constant 0 : index
    %c0_2 = arith.constant 0 : index
    %1 = vector.load %arg2[%c0_1, %c0_2] : memref<16x16xf32, #tpu.memory_space<vmem>>, vector<16x16xf32>
    %cst = arith.constant dense<0.000000e+00> : vector<16x16xf32>
    %2 = tpu.matmul %0, %1, %cst {dimension_numbers = #tpu.dot_dimension_numbers<[1], [0], [0], [1], [0, 0, 1, 1], [], []>, precision = #tpu.contract_precision<fp32>} : vector<16x16xf32>, vector<16x16xf32>, vector<16x16xf32> -> vector<16x16xf32>
    %3 = vector.extract_strided_slice %2 {offsets = [0, 0], sizes = [16, 8], strides = [1, 1]} : vector<16x16xf32> to vector<16x8xf32>
    %4 = vector.shape_cast %3 : vector<16x8xf32> to vector<2x8x8xf32>
    %c0_3 = arith.constant 0 : index
    %c0_4 = arith.constant 0 : index
    %c0_5 = arith.constant 0 : index
    %c0_6 = arith.constant 0 : index
    %5 = vector.load %arg3[%c0_3, %c0_4, %c0_5, %c0_6] : memref<2x4x8x8xf32, #tpu.memory_space<vmem>>, vector<2x1x8x8xf32>
    %6 = vector.shape_cast %5 : vector<2x1x8x8xf32> to vector<2x8x8xf32>
    %7 = vector.shape_cast %4 : vector<2x8x8xf32> to vector<2x1x8x8xf32>
    tpu.vector_store %arg3[%c0_3, %c0_4, %c0_5, %c0_6], %7 {strides = array<i32>} : memref<2x4x8x8xf32, #tpu.memory_space<vmem>>, vector<2x1x8x8xf32>,
    %8 = vector.extract_strided_slice %2 {offsets = [0, 8], sizes = [16, 8], strides = [1, 1]} : vector<16x16xf32> to vector<16x8xf32>
    %9 = vector.shape_cast %8 : vector<16x8xf32> to vector<2x8x8xf32>
    %c0_7 = arith.constant 0 : index
    %c1 = arith.constant 1 : index
    %c0_8 = arith.constant 0 : index
    %c0_9 = arith.constant 0 : index
    %10 = vector.load %arg3[%c0_7, %c1, %c0_8, %c0_9] : memref<2x4x8x8xf32, #tpu.memory_space<vmem>>, vector<2x1x8x8xf32>
    %11 = vector.shape_cast %10 : vector<2x1x8x8xf32> to vector<2x8x8xf32>
    %12 = vector.shape_cast %9 : vector<2x8x8xf32> to vector<2x1x8x8xf32>
    tpu.vector_store %arg3[%c0_7, %c1, %c0_8, %c0_9], %12 {strides = array<i32>} : memref<2x4x8x8xf32, #tpu.memory_space<vmem>>, vector<2x1x8x8xf32>,
    %c0_10 = arith.constant 0 : index
    %c16 = arith.constant 16 : index
    %13 = vector.load %arg1[%c0_10, %c16] : memref<16x32xf32, #tpu.memory_space<vmem>>, vector<16x16xf32>
    %c0_11 = arith.constant 0 : index
    %c0_12 = arith.constant 0 : index
    %14 = vector.load %arg2[%c0_11, %c0_12] : memref<16x16xf32, #tpu.memory_space<vmem>>, vector<16x16xf32>
    %cst_13 = arith.constant dense<0.000000e+00> : vector<16x16xf32>
    %15 = tpu.matmul %13, %14, %cst_13 {dimension_numbers = #tpu.dot_dimension_numbers<[1], [0], [0], [1], [0, 0, 1, 1], [], []>, precision = #tpu.contract_precision<fp32>} : vector<16x16xf32>, vector<16x16xf32>, vector<16x16xf32> -> vector<16x16xf32>
    %16 = vector.extract_strided_slice %15 {offsets = [0, 0], sizes = [16, 8], strides = [1, 1]} : vector<16x16xf32> to vector<16x8xf32>
    %17 = vector.shape_cast %16 : vector<16x8xf32> to vector<2x8x8xf32>
    %c0_14 = arith.constant 0 : index
    %c2 = arith.constant 2 : index
    %c0_15 = arith.constant 0 : index
    %c0_16 = arith.constant 0 : index
    %18 = vector.load %arg3[%c0_14, %c2, %c0_15, %c0_16] : memref<2x4x8x8xf32, #tpu.memory_space<vmem>>, vector<2x1x8x8xf32>
    %19 = vector.shape_cast %18 : vector<2x1x8x8xf32> to vector<2x8x8xf32>
    %20 = vector.shape_cast %17 : vector<2x8x8xf32> to vector<2x1x8x8xf32>
    tpu.vector_store %arg3[%c0_14, %c2, %c0_15, %c0_16], %20 {strides = array<i32>} : memref<2x4x8x8xf32, #tpu.memory_space<vmem>>, vector<2x1x8x8xf32>,
    %21 = vector.extract_strided_slice %15 {offsets = [0, 8], sizes = [16, 8], strides = [1, 1]} : vector<16x16xf32> to vector<16x8xf32>
    %22 = vector.shape_cast %21 : vector<16x8xf32> to vector<2x8x8xf32>
    %c0_17 = arith.constant 0 : index
    %c3 = arith.constant 3 : index
    %c0_18 = arith.constant 0 : index
    %c0_19 = arith.constant 0 : index
    %23 = vector.load %arg3[%c0_17, %c3, %c0_18, %c0_19] : memref<2x4x8x8xf32, #tpu.memory_space<vmem>>, vector<2x1x8x8xf32>
    %24 = vector.shape_cast %23 : vector<2x1x8x8xf32> to vector<2x8x8xf32>
    %25 = vector.shape_cast %22 : vector<2x8x8xf32> to vector<2x1x8x8xf32>
    tpu.vector_store %arg3[%c0_17, %c3, %c0_18, %c0_19], %25 {strides = array<i32>} : memref<2x4x8x8xf32, #tpu.memory_space<vmem>>, vector<2x1x8x8xf32>,
    return
  }
  func.func @transform_0(%arg0: i32) -> (i32, i32) {
    %c0_i32 = arith.constant 0 : i32
    %c0_i32_0 = arith.constant 0 : i32
    return %arg0, %c0_i32 : i32, i32
  }
  func.func @transform_1(%arg0: i32) -> (i32, i32) {
    %c0_i32 = arith.constant 0 : i32
    %c0_i32_0 = arith.constant 0 : i32
    %c0_i32_1 = arith.constant 0 : i32
    return %c0_i32, %c0_i32_0 : i32, i32
  }
  func.func @transform_2(%arg0: i32) -> (i32, i32, i32, i32) {
    %c0_i32 = arith.constant 0 : i32
    %c0_i32_0 = arith.constant 0 : i32
    %c0_i32_1 = arith.constant 0 : i32
    %c0_i32_2 = arith.constant 0 : i32
    return %arg0, %c0_i32, %c0_i32_0, %c0_i32_1 : i32, i32, i32, i32
  }
}

</mosaic_0001>

<bundles_post_ra>
// kernel: tpu_custom_call.1
= control target key start
LH: loop header
LB: loop body
LE: loop exit
PB: predicated region body
PF: predicated region fallthrough
CT: control target
= control target key end

     0   :  { %7 = vsyncpa [#allocation3], 0  ;;  %s1755_s0 = inlined_call_operand.vmem [shape: f32[64,32], index: 0, kind: input, shape index: {}]   ;;  %s1756_s1 = inlined_call_operand.vmem [shape: f32[16,16], index: 1, kind: input, shape index: {}]   ;;  %s1757_s2 = inlined_call_operand.hbm [shape: f32[8,4,8,8], index: 2, kind: output, shape index: {}]  }
   0x1   :  { %9 = vsyncpa [#allocation3 + $0x1], 0  ;;  %s1557_s9 = smov 0   ;;  %s1559_s10 = smov 0  }
   0x2   :  { %s1561_s11 = smov 0   ;;  %s1563_s12 = smov 0  }
   0x3 LB: > { %s1578_s13 = sadd.s32 4294967295, %s1535_s12   ;;  %s1279_s14 = sadd.s32 4294967294, %s1535_s12   ;;  %s1535_s12 = sphi %s1563_s12, %s1763_s12   ;;  %s1531_s11 = sphi %s1561_s11, %s1762_s11   ;;  %s1527_s10 = sphi %s1559_s10, %s1761_s10   ;;  %s1523_s9 = sphi %s1557_s9, %s1760_s9  }
   0x4   : > { %s1582_s15 = sadd.s32 1, %s1535_s12   ;;  %s69_s16 = sadd.s32 1, %s1531_s11 }
   0x5   : > { %s66_s17 = ssub.s32 %s1535_s12, %s1582_s15  ;;  %p79_p0 = scmp.ne.s32.totalorder %s1531_s11, %s1527_s10 }
   0x6   : > { %p67_p1 = scmp.eq.s32.totalorder %s66_s17, 0  ;;  %p80_p2 = scmp.eq.s32.totalorder %s1578_s13, 3 }
   0x7   : > { %p85_p3 = scmp.ne.s32.totalorder %s1527_s10, %s1523_s9  ;;  %p86_p4 = scmp.eq.s32.totalorder %s1279_s14, 3 }
   0x8   : > { %s1593_s18 = scalar_select %p67_p1, %s1531_s11, %s69_s16  }
   0x9   : > { %p1595_p5 = por %p80_p2, %p79_p0  ;;  %p1599_p6 = por %p86_p4, %p85_p3 }
   0xa   : > { %p1282_p7 = scmp.ge.s32.totalorder %s1535_s12, 1  ;;  %p116_p8 = scmp.lt.s32.totalorder %s1535_s12, 5 }
   0xc   : > { %p117_p9 = pnand %p1282_p7, %p116_p8 }
   0xd   : > { %s1284_s21 = sshll.u32 (!%p117_p9), %s1578_s13, 1  ;;  %s1537_s30 = smov (!%p117_p9), 112  }
   0xe   : > { %120 = sbr.rel (%p117_p9) target bundleno = 489 (0x1e9), region = 28  ;;  %p139_p10 = scmp.lt.s32.totalorder (!%p117_p9), %s1284_s21, 7 }
   0xf   : > { %s135_s3 = sand.u32 (!%p117_p9), 1, %s1527_s10   ;;  %s1538_s5 = smov (!%p117_p9), 120  }
  0x10   : > { %s1283_s4 = sshll.u32 (!%p117_p9), %s135_s3, 6  ;;  %s1299_s7 = sshll.u32 (!%p117_p9), %s1578_s13, 10 }
  0x11   : > { %s1683_s6 = scalar_lea.vmem (!%p117_p9), [#allocation2], %s1283_s4  ;;  %s1705_s17 = scalar_lea.hbm (!%p117_p9), %s1757_s2, %s1299_s7 }
  0x12   : > { %s1217_s8 = sshll.u32 (!%p117_p9), %s1683_s6, 4  ;;  %s1539_s22 = smov (!%p117_p9), [#allocation2]   ;;  %s1707_s8 = int_to_ptr.vmem [resolvable:$true] %s1217_s8 }
  0x13   : > { %v148_v0 = vld [vmem:[%s1756_s1 + $0x8] sm:$0xff]  ;;  %v147_v1 = vld [vmem:[%s1756_s1] sm:$0xff]  ;;  %s1765_s21 = smov (!%p139_p10, %s1284_s21), 7  ;;  %vm149_vm0 = vcmask 130048   ;;  %vm658_vm1 = vcmask 64512   ;;  %s1475_s13 = scalar_lea.vmem %s1707_s8, 1024 }
  0x14   : > { %v1612_v2 = vand.u32 4294901760, %v148_v0  ;;  %v1614_v3 = vand.u32 4294901760, %v147_v1  ;;  %s1285_s26 = sshll.u32 %s1765_s21, 3  ;;  %s1715_s21 = scalar_lea.sflag [#allocation3], %s135_s3 }
  0x15   : > { %s142_s29 = scalar_lea.vmem %s1755_s0, %s1285_s26  ;;  %p1476_p11 = scmp.ne.s32.totalorder %s1707_s8, %s1475_s13 }
  0x16   : > { %v1617_v4 = vsub.f32 %v148_v0, %v1612_v2  ;;  %v1620_v5 = vsub.f32 %v147_v1, %v1614_v3  ;;  %1348 = vmatprep.subr.mxu0 %v1612_v2  ;;  %v672_v8 = vld [vmem:[%s142_s29] sm:$0xff]  ;;  %v146_v9 = vld [vmem:[%s142_s29 + $0x8] sm:$0xff]  ;;  %s1479_s23 = sshll.u32 %s1539_s22, 4  ;;  %s1480_s23 = int_to_ptr.vmem [resolvable:$false] %s1479_s23 }
  0x17   : > { %1349 = vmatpush3.msra.mxu0 %v1612_v2  ;;  %678 = vrot.lane.b32.xlu0 %v672_v8, %s1537_s30  ;;  %v151_v12 = vsel %vm149_vm0, %v672_v8, 0  ;;  %v154_v13 = vsel %vm149_vm0, %v146_v9, 0  ;;  %p1477_p12 = pnand %p1476_p11, %p1595_p5  ;;  %s1481_s24 = scalar_lea.vmem %s1480_s23, 2048 }
  0x18   : > { %v1625_v6 = vand.u32 4294901760, %v1617_v4  ;;  %v1628_v7 = vand.u32 4294901760, %v1620_v5  ;;  %1350 = vmatprep.subr.mxu0 %v1614_v3  ;;  %v223_v16 = vand.u32 4294901760, %v151_v12  ;;  %v233_v17 = vand.u32 4294901760, %v154_v13  ;;  %p1482_p0 = scmp.lt.s32.totalorder %s1707_s8, %s1480_s23  ;;  %p1483_p1 = scmp.lt.s32.totalorder %s1481_s24, %s1475_s13 }
  0x19   : > { %1351 = vmatpush3.msra.mxu0 %v1614_v3  ;;  %p1478_p13 = pneg %p1477_p12 }
  0x1a   : > { %v275_v10 = vsub.f32 %v1617_v4, %v1625_v6  ;;  %v282_v11 = vsub.f32 %v1620_v5, %v1628_v7  ;;  %1362 = vmatprep.subr.mxu0 %v1617_v4  ;;  %1359 = vmatprep.mubr.f32.mxu1 %v223_v16  ;;  %v224_v18 = vsub.f32 %v151_v12, %v223_v16  ;;  %p1484_p2 = por %p1483_p1, %p1482_p0 }
  0x1b   : > { %v234_v19 = vsub.f32 %v154_v13, %v233_v17  ;;  %680 = vrot.lane.b32.xlu0 %v146_v9, %s1537_s30 }
  0x1c   : > { %v276_v14 = vand.u32 4294901760, %v275_v10  ;;  %v283_v15 = vand.u32 4294901760, %v282_v11  ;;  %v225_v20 = vand.u32 4294901760, %v224_v18  ;;  %p1485_p3 = pnand %p1484_p2, %p1478_p13 }
  0x1d   : > { %v235_v21 = vand.u32 4294901760, %v234_v19 }
  0x1e   : > { %1355 = vmatprep.subr.mxu1 %v276_v14  ;;  %v226_v22 = vsub.f32 %v224_v18, %v225_v20 }
  0x1f   : > { %1356 = vmatpush3.msra.mxu1 %v276_v14  ;;  %v236_v23 = vsub.f32 %v234_v19, %v235_v21 }
  0x20   : > { %1357 = vmatprep.subr.mxu1 %v283_v15  ;;  %v227_v24 = vand.u32 4294901760, %v226_v22 }
  0x21   : > { %1358 = vmatpush3.msra.mxu1 %v283_v15  ;;  %v237_v25 = vand.u32 4294901760, %v236_v23 }
  0x22   : > { %1360 = vmatmul.mubr.f32.vlgmr.msra.gmra.mxu1 %v233_v17  ;;  %1369 = vmatprep.subr.mxu1 %v1612_v2 }
  0x23   : > { %1370 = vmatpush3.msra.mxu1 %v1612_v2  ;;  %1373 = vmatprep.mubr.f32.mxu1 %v225_v20 }
  0x24   : > { %1371 = vmatprep.subr.mxu1 %v1614_v3  ;;  %1352 = vmatprep.mubr.f32.mxu0 %v227_v24 }
  0x25   : > { %1372 = vmatpush3.msra.mxu1 %v1614_v3  ;;  %1353 = vmatmul.mubr.f32.vlgmr.msra.gmra.mxu0 %v237_v25 }
  0x26   : > { %1374 = vmatmul.mubr.f32.vlgmr.msra.gmra.mxu1 %v235_v21  ;;  %1383 = vmatprep.subr.mxu1 %v1612_v2 }
  0x27   : > { %1363 = vmatpush3.msra.mxu0 %v1617_v4  ;;  %1384 = vmatpush3.msra.mxu1 %v1612_v2 }
  0x28   : > { %1364 = vmatprep.subr.mxu0 %v1620_v5  ;;  %1366 = vmatprep.mubr.f32.mxu0 %v224_v18 }
  0x29   : > { %1365 = vmatpush3.msra.mxu0 %v1620_v5  ;;  %1385 = vmatprep.subr.mxu1 %v1614_v3 }
  0x2a   : > { %1367 = vmatmul.mubr.f32.vlgmr.msra.gmra.mxu0 %v234_v19  ;;  %1376 = vmatprep.subr.mxu0 %v1625_v6 }
  0x2b   : > { %1386 = vmatpush3.msra.mxu1 %v1614_v3  ;;  %1387 = vmatprep.mubr.f32.mxu1 %v223_v16 }
  0x2c   : > { %1377 = vmatpush3.msra.mxu0 %v1625_v6  ;;  %1388 = vmatmul.mubr.f32.vlgmr.msra.gmra.mxu1 %v233_v17 }
  0x2d   : > { %1378 = vmatprep.subr.mxu0 %v1628_v7  ;;  %1397 = vmatprep.subr.mxu1 %v276_v14 }
  0x2e   : > { %1379 = vmatpush3.msra.mxu0 %v1628_v7  ;;  %1380 = vmatprep.mubr.f32.mxu0 %v223_v16 }
  0x2f   : > { %1398 = vmatpush3.msra.mxu1 %v276_v14  ;;  %1381 = vmatmul.mubr.f32.vlgmr.msra.gmra.mxu0 %v233_v17 }
  0x30   : > { %1399 = vmatprep.subr.mxu1 %v283_v15  ;;  %1390 = vmatprep.subr.mxu0 %v1612_v2 }
  0x31   : > { %1400 = vmatpush3.msra.mxu1 %v283_v15  ;;  %1391 = vmatpush3.msra.mxu0 %v1612_v2 }
  0x32   : > { %1411 = vmatprep.subr.mxu1 %v1612_v2  ;;  %1392 = vmatprep.subr.mxu0 %v1614_v3 }
  0x33   : > { %1393 = vmatpush3.msra.mxu0 %v1614_v3 }
  0x34   : > { %1404 = vmatprep.subr.mxu0 %v1617_v4 }
  0x89   : > { %v679_v26 = vpop.permute.xlu0 %678 }
  0x8a   : > { %v682_v27 = vsel %vm149_vm0, %v679_v26, 0 }
  0x8b   : > { %v753_v28 = vand.u32 4294901760, %v682_v27 }
  0x8d   : > { %v754_v29 = vsub.f32 %v682_v27, %v753_v28  ;;  %v681_v30 = vpop.permute.xlu0 %680  ;;  %1401 = vmatprep.mubr.f32.mxu1 %v753_v28 }
  0x8e   : > { %v684_v31 = vsel %vm149_vm0, %v681_v30, 0 }
  0x8f   : > { %v763_v32 = vand.u32 4294901760, %v684_v31  ;;  %v755_v33 = vand.u32 4294901760, %v754_v29 }
  0x91   : > { %v764_v34 = vsub.f32 %v684_v31, %v763_v32  ;;  %1402 = vmatmul.mubr.f32.vlgmr.msra.gmra.mxu1 %v763_v32  ;;  %v756_v35 = vsub.f32 %v754_v29, %v755_v33 }
  0x92   : > { %1412 = vmatpush3.msra.mxu1 %v1612_v2  ;;  %1415 = vmatprep.mubr.f32.mxu1 %v755_v33 }
  0x93   : > { %v765_v36 = vand.u32 4294901760, %v764_v34  ;;  %1413 = vmatprep.subr.mxu1 %v1614_v3  ;;  %v757_v37 = vand.u32 4294901760, %v756_v35 }
  0x94   : > { %1414 = vmatpush3.msra.mxu1 %v1614_v3 }
  0x95   : > { %v766_v38 = vsub.f32 %v764_v34, %v765_v36  ;;  %1394 = vmatprep.mubr.f32.mxu0 %v757_v37  ;;  %1416 = vmatmul.mubr.f32.vlgmr.msra.gmra.mxu1 %v765_v36 }
  0x96   : > { %1425 = vmatprep.subr.mxu1 %v1612_v2  ;;  %1429 = vmatprep.mubr.f32.mxu1 %v753_v28 }
  0x97   : > { %v767_v39 = vand.u32 4294901760, %v766_v38  ;;  %1426 = vmatpush3.msra.mxu1 %v1612_v2 }
  0x98   : > { %1427 = vmatprep.subr.mxu1 %v1614_v3 }
  0x99   : > { %1428 = vmatpush3.msra.mxu1 %v1614_v3  ;;  %1395 = vmatmul.mubr.f32.vlgmr.msra.gmra.mxu0 %v767_v39 }
  0x9a   : > { %1405 = vmatpush3.msra.mxu0 %v1617_v4  ;;  %1430 = vmatmul.mubr.f32.vlgmr.msra.gmra.mxu1 %v763_v32 }
  0x9b   : > { %1406 = vmatprep.subr.mxu0 %v1620_v5  ;;  %1408 = vmatprep.mubr.f32.mxu0 %v754_v29 }
  0x9c   : > { %1407 = vmatpush3.msra.mxu0 %v1620_v5 }
  0x9d   : > { %1418 = vmatprep.subr.mxu0 %v1625_v6  ;;  %1409 = vmatmul.mubr.f32.vlgmr.msra.gmra.mxu0 %v764_v34 }
  0x9e   : > { %1419 = vmatpush3.msra.mxu0 %v1625_v6  ;;  %1422 = vmatprep.mubr.f32.mxu0 %v753_v28 }
  0x9f   : > { %1420 = vmatprep.subr.mxu0 %v1628_v7 }
  0xa0   : > { %1421 = vmatpush3.msra.mxu0 %v1628_v7 }
  0xa1   : > { %1423 = vmatmul.mubr.f32.vlgmr.msra.gmra.mxu0 %v763_v32 }
  0xe2   : > { %v1361_v40 = vpop.f32.mrf.mxu1 }
  0xe4   : > { %v320_v41 = vpop.f32.mrf.mxu1 }
  0xe5   : > { %v1354_v42 = vpop.f32.mrf.mxu0 }
  0xe6   : > { %v327_v43 = vadd.f32 %v1361_v40, %v1354_v42  ;;  %v1375_v44 = vpop.f32.mrf.mxu1 }
  0xe7   : > { %v229_v45 = vpop.f32.mrf.mxu0 }
  0xe8   : > { %v321_v46 = vadd.f32 %v320_v41, %v229_v45  ;;  %v484_v49 = vpop.f32.mrf.mxu1 }
  0xea   : > { %v1368_v47 = vpop.f32.mrf.mxu0 }
  0xeb   : > { %v410_v48 = vadd.f32 %v1368_v47, %v327_v43 }
  0xec   : > { %v402_v50 = vpop.f32.mrf.mxu0  ;;  %v1389_v53 = vpop.f32.mrf.mxu1 }
  0xed   : > { %v403_v51 = vadd.f32 %v402_v50, %v321_v46  ;;  %v493_v52 = vadd.f32 %v1375_v44, %v410_v48 }
  0xee   : > { %v648_v60 = vpop.f32.mrf.mxu1 }
  0xef   : > { %v1382_v54 = vpop.f32.mrf.mxu0  ;;  %v485_v55 = vadd.f32 %v484_v49, %v403_v51 }
  0xf0   : > { %v576_v56 = vadd.f32 %v1382_v54, %v493_v52 }
  0xf1   : > { %v569_v57 = vpop.f32.mrf.mxu0 }
  0xf2   : > { %v570_v58 = vadd.f32 %v569_v57, %v485_v55  ;;  %v655_v59 = vadd.f32 %v1389_v53, %v576_v56 }
  0xf4   : > { %v649_v61 = vadd.f32 %v648_v60, %v570_v58  ;;  %665 = vrot.lane.b32.xlu1 %v655_v59, %s1538_s5  ;;  %660 = vst.msk [vmem:[%s1683_s6 + $0x20] sm:$0xff] %vm658_vm1, %v655_v59 }
  0xf6   : > { %659 = vst.msk [vmem:[%s1683_s6] sm:$0xff] %vm658_vm1, %v649_v61 }
  0xf8   : > { %663 = vrot.lane.b32.xlu1 %v649_v61, %s1538_s5 }
 0x151   : > { %v1403_v62 = vpop.f32.mrf.mxu1 }
 0x153   : > { %v850_v63 = vpop.f32.mrf.mxu1 }
 0x155   : > { %v1417_v0 = vpop.f32.mrf.mxu1 }
 0x157   : > { %v1014_v4 = vpop.f32.mrf.mxu1 }
 0x159   : > { %v1396_v1 = vpop.f32.mrf.mxu0 }
 0x15a   : > { %v857_v3 = vadd.f32 %v1403_v62, %v1396_v1  ;;  %v1431_v11 = vpop.f32.mrf.mxu1 }
 0x15b   : > { %v759_v2 = vpop.f32.mrf.mxu0 }
 0x15c   : > { %v851_v6 = vadd.f32 %v850_v63, %v759_v2  ;;  %v1178_v19 = vpop.f32.mrf.mxu1 }
 0x15d   : > { %v1410_v5 = vpop.f32.mrf.mxu0 }
 0x15e   : > { %v940_v7 = vadd.f32 %v1410_v5, %v857_v3 }
 0x15f   : > { %v932_v8 = vpop.f32.mrf.mxu0 }
 0x160   : > { %v933_v9 = vadd.f32 %v932_v8, %v851_v6  ;;  %v1023_v10 = vadd.f32 %v1417_v0, %v940_v7 }
 0x161   : > { %v1424_v12 = vpop.f32.mrf.mxu0 }
 0x162   : > { %v1106_v13 = vadd.f32 %v1424_v12, %v1023_v10  ;;  %v1015_v14 = vadd.f32 %v1014_v4, %v933_v9 }
 0x163   : > { %v1099_v15 = vpop.f32.mrf.mxu0 }
 0x164   : > { %v1185_v17 = vadd.f32 %v1431_v11, %v1106_v13  ;;  %v1100_v18 = vadd.f32 %v1099_v15, %v1015_v14 }
 0x166   : > { %v666_v16 = vpop.permute.xlu1 %665  ;;  %1289 = vst.msk [vmem:[%s1683_s6 + $0x30] sm:$0xff] %vm658_vm1, %v1185_v17  ;;  %v1179_v20 = vadd.f32 %v1178_v19, %v1100_v18  ;;  %1195 = vrot.lane.b32.xlu1 %v1185_v17, %s1538_s5 }
 0x167   : > { %1287 = vst.msk [vmem:[%s1683_s6 + $0x28] sm:$0xff] %vm658_vm1, %v666_v16 }
 0x168   : > { %1288 = vst.msk [vmem:[%s1683_s6 + $0x10] sm:$0xff] %vm658_vm1, %v1179_v20  ;;  %1193 = vrot.lane.b32.xlu0 %v1179_v20, %s1538_s5 }
 0x16a   : > { %v664_v21 = vpop.permute.xlu1 %663 }
 0x16b   : > { %1286 = vst.msk [vmem:[%s1683_s6 + $0x8] sm:$0xff] %vm658_vm1, %v664_v21 }
 0x1d8   : > { %v1196_v22 = vpop.permute.xlu1 %1195 }
 0x1d9   : > { %1291 = vst.msk [vmem:[%s1683_s6 + $0x38] sm:$0xff] %vm658_vm1, %v1196_v22 }
 0x1da   : > { %v1194_v23 = vpop.permute.xlu0 %1193 }
 0x1db   : > { %1290 = vst.msk [vmem:[%s1683_s6 + $0x18] sm:$0xff] %vm658_vm1, %v1194_v23 }
 0x1dc   : > { %1488 = shalt.err (!%p1485_p3)
}
 0x1dd   : > { %s1489_s25 = scalar_lea.hbm %s1705_s17, 1024  ;;  %s1493_s28 = scalar_lea.hbm %s1757_s2, 4096 }
 0x1de   : > { %p1490_p4 = scmp.ne.s32.totalorder %s1705_s17, %s1489_s25  ;;  %p1494_p9 = scmp.lt.s32.totalorder %s1705_s17, %s1757_s2 }
 0x1df   : > { %p1495_p10 = scmp.lt.s32.totalorder %s1493_s28, %s1489_s25 }
 0x1e0   : > { %p1491_p7 = pnand %p1490_p4, %p1595_p5 }
 0x1e1   : > { %p1496_p11 = por %p1495_p10, %p1494_p9 }
 0x1e2   : > { %p1492_p8 = pneg %p1491_p7 }
 0x1e4   : > { %p1497_p12 = pnand %p1496_p11, %p1492_p8 }
 0x1e6   : > { %1500 = shalt.err (!%p1497_p12)
}
 0x1e7   : > { %s1540_s3 = smov 128   ;;  %s1541_s4 = smov 8  }
 0x1e8   : > { %1432 = dma.vmem_to_hbm [thread:$0]  (%p1595_p5), %s1707_s8, 1024, %s1705_s17, %s1715_s21, %s1540_s3, %s1540_s3, %s1541_s4  }
 0x1e9 PF: > { %p1438_p13 = scmp.ge.s32.totalorder %s1535_s12, 2  ;;  %s1232_s5 = sand.u32 1, %s1523_s9  }
 0x1ea   : > { %s1233_s6 = scalar_lea.sflag [#allocation3], %s1232_s5 }
 0x1eb   : > { %p1435_p0 = pnand %p1438_p13, %p1599_p6 }
 0x1ed   : > { %p1436_p1 = pneg %p1435_p0 }
 0x1ef   : > { %1518 = dma.done.wait (%p1436_p1), %s1233_s6, 1024  }
 0x1f0   : > { %1520 = vsyncadd (%p1436_p1), %s1233_s6, 4294966272  ;;  %p12_p2 = scmp.ge.s32.totalorder %s1582_s15, 6   ;;  %s1760_s9 = smov %s1527_s10 }
 0x1f1   : > { %s1761_s10 = smov %s1531_s11  ;;  %s1762_s11 = smov %s1593_s18 }
 0x1f2   : > { %s1763_s12 = smov %s1582_s15  ;;  %14 = sbr.rel (!%p12_p2) target bundleno = 3 (0x3), region = 66 }
 0x1f7   :  { %1238 = vsyncpa [#allocation3], 1 }
 0x1f8   :  { %1240 = vsyncpa [#allocation3 + $0x1], 1 }

</bundles_post_ra>
